<compile_context>
chip_gen: v5e
topology: v5e:2x2
jax: 0.10.0
libtpu: 0.0.40
codegen_flags: <defaults>
</compile_context>

<pallas_src>
import jax
import jax.numpy as jnp
from jax.experimental import pallas as pl
from jax.experimental.pallas import tpu as pltpu

HID = 32              # hidden width of the synthetic render MLP
PACK = 4              # pixels packed per lane column (block-diagonal weights)
MAX_TM_COLS = 16384   # packed columns per grid step (= 65536 pixels)


def _round_up(n, m):
    return ((n + m - 1) // m) * m


def _block_diag(block, n):
    """n copies of `block` on the diagonal, zeros elsewhere."""
    r, c = block.shape
    out = jnp.zeros((n * r, n * c), block.dtype)
    for i in range(n):
        out = out.at[i * r:(i + 1) * r, i * c:(i + 1) * c].set(block)
    return out


def _render_kernel(x_ref, w1_ref, b1_ref, w2_ref, b2_ref, o_ref):
    # x_ref : (6*PACK, TM)      bf16   pixels on the lane axis, 4 pixels / column
    # w1_ref: (PACK*HID, 6*PACK) bf16  block-diagonal W1^T
    # b1_ref: (PACK*HID, 1)     f32
    # w2_ref: (PACK*4, PACK*HID) bf16  block-diagonal W2^T
    # b2_ref: (PACK*4, 1)       f32
    # o_ref : (PACK*4, TM)      bf16   lane-dense, zero sublane padding (16 rows)
    h = jnp.dot(w1_ref[...], x_ref[...], preferred_element_type=jnp.float32)
    h = jnp.maximum(h + b1_ref[...], 0.0).astype(jnp.bfloat16)     # (128, TM) bf16
    y = jnp.dot(w2_ref[...], h, preferred_element_type=jnp.float32)  # (16, TM) f32
    y = y + b2_ref[...]
    # sigmoid(y) == 0.5*tanh(0.5*y) + 0.5 : single EUP transcendental, bounded.
    o_ref[...] = (0.5 * jnp.tanh(0.5 * y) + 0.5).astype(o_ref.dtype)


def make_render(params):
    """Returns render: rays [H, W, 6] -> image [H, W, 4] backed by a Pallas kernel."""
    w1, b1, w2, b2 = params
    # Channel-major, block-diagonal (4-pixel) weights; bf16 MXU operands.
    w1t = jnp.asarray(w1.T, dtype=jnp.bfloat16)                    # (HID, 6)
    w2t = jnp.asarray(w2.T, dtype=jnp.bfloat16)                    # (4, HID)
    w1_blk = _block_diag(w1t, PACK)                                # (128, 24) bf16
    w2_blk = _block_diag(w2t, PACK)                                # (16, 128) bf16
    b1_blk = jnp.tile(jnp.asarray(b1, jnp.float32).reshape(HID, 1), (PACK, 1))  # (128,1)
    b2_blk = jnp.tile(jnp.asarray(b2, jnp.float32).reshape(4, 1), (PACK, 1))    # (16,1)

    def render(rays):
        H, W, C = rays.shape
        assert C == 6
        M = H * W
        Mp = _round_up(M, PACK)

        x = rays.reshape(M, C)
        if Mp != M:
            x = jnp.pad(x, ((0, Mp - M), (0, 0)))
        cols = Mp // PACK

        # (cols, 24) -> (24, cols) bf16: the only wrapper-side input copy,
        # done at half (bf16) width with the big pixel axis on lanes.
        x_t = x.astype(jnp.bfloat16).reshape(cols, C * PACK).T

        # Tile choice: big (up to 65536 pixels) but always >= 2 grid steps so
        # the parallel axis spans both v7x TensorCores.
        tm = max(128, min(MAX_TM_COLS, _round_up(pl.cdiv(cols, 2), 128)))
        grid = (pl.cdiv(cols, tm),)

        out = pl.pallas_call(
            _render_kernel,
            out_shape=jax.ShapeDtypeStruct((PACK * 4, cols), jnp.bfloat16),
            grid_spec=pltpu.PrefetchScalarGridSpec(
                num_scalar_prefetch=0,
                grid=grid,
                in_specs=[
                    pl.BlockSpec((C * PACK, tm), lambda i: (0, i)),        # rays tile
                    pl.BlockSpec((PACK * HID, C * PACK), lambda i: (0, 0)),  # W1 blkdiag
                    pl.BlockSpec((PACK * HID, 1), lambda i: (0, 0)),         # b1
                    pl.BlockSpec((PACK * 4, PACK * HID), lambda i: (0, 0)),  # W2 blkdiag
                    pl.BlockSpec((PACK * 4, 1), lambda i: (0, 0)),           # b2
                ],
                out_specs=pl.BlockSpec((PACK * 4, tm), lambda i: (0, i)),
            ),
            compiler_params=pltpu.CompilerParams(
                dimension_semantics=("parallel",),
                vmem_limit_bytes=48 * 1024 * 1024,
            ),
        )(x_t, w1_blk, b1_blk, w2_blk, b2_blk)

        # (16, cols) -> (cols, 16) -> (Mp, 4): pure relabel after the transpose.
        img = out.T.reshape(Mp, 4)[:M].reshape(H, W, 4)
        return img.astype(jnp.float32)

    return jax.jit(render)


def nerf_forward(rays, render):
    """Mirror of NeRF.forward: output = render(rays)."""
    return render(rays)


def init_params(key):
    k1, k2, k3, k4 = jax.random.split(key, 4)
    w1 = jax.random.normal(k1, (6, HID), jnp.float32) * 0.5
    b1 = jax.random.normal(k2, (1, HID), jnp.float32) * 0.1
    w2 = jax.random.normal(k3, (HID, 4), jnp.float32) * 0.5
    b2 = jax.random.normal(k4, (1, 4), jnp.float32) * 0.1
    return w1, b1, w2, b2


if __name__ == "__main__":
    key = jax.random.PRNGKey(0)
    pkey, rkey = jax.random.split(key)

    params = init_params(pkey)
    render = make_render(params)

    # small shape consistent with [H, W, 6] rays (reference uses 1920x1080x6)
    H, W = 64, 32
    rays = jax.random.normal(rkey, (H, W, 6), jnp.float32)

    out = nerf_forward(rays, render)
    out = jax.block_until_ready(out)

    assert out.shape == (H, W, 4), out.shape
    assert out.dtype == jnp.float32

    # pure-JAX reference with matching bf16 casts (inputs, weights, hidden, output)
    w1, b1, w2, b2 = params
    xb = rays.reshape(-1, 6).astype(jnp.bfloat16).astype(jnp.float32)
    w1b = w1.astype(jnp.bfloat16).astype(jnp.float32)
    w2b = w2.astype(jnp.bfloat16).astype(jnp.float32)
    h = jnp.maximum(xb @ w1b + b1, 0.0).astype(jnp.bfloat16).astype(jnp.float32)
    ref = jax.nn.sigmoid(h @ w2b + b2)
    ref = ref.astype(jnp.bfloat16).astype(jnp.float32).reshape(H, W, 4)

    err = float(jnp.max(jnp.abs(out - ref)))
    assert err < 1e-2, err

    print("KERNEL_OK")
</pallas_src>

<mosaic_0001>
module attributes {stable_mosaic.version = 11 : i64} {
  func.func @_render_kernel(%arg0: i32, %arg1: memref<24x256xbf16, #tpu.memory_space<vmem>>, %arg2: memref<128x24xbf16, #tpu.memory_space<vmem>>, %arg3: memref<128x1xf32, #tpu.memory_space<vmem>>, %arg4: memref<16x128xbf16, #tpu.memory_space<vmem>>, %arg5: memref<16x1xf32, #tpu.memory_space<vmem>>, %arg6: memref<16x256xbf16, #tpu.memory_space<vmem>>) attributes {dimension_semantics = [#tpu.dimension_semantics<parallel>], iteration_bounds = array<i64: 2>, scalar_prefetch = 0 : i64, scratch_operands = 0 : i64, tpu.core_type = #tpu.core_type<tc>, window_params = [{transform_indices = @transform_0, window_bounds = array<i64: 24, 256>}, {pipeline_mode = #tpu.pipeline_mode<synchronous>, transform_indices = @transform_1, window_bounds = array<i64: 128, 24>}, {pipeline_mode = #tpu.pipeline_mode<synchronous>, transform_indices = @transform_2, window_bounds = array<i64: 128, 1>}, {pipeline_mode = #tpu.pipeline_mode<synchronous>, transform_indices = @transform_3, window_bounds = array<i64: 16, 128>}, {pipeline_mode = #tpu.pipeline_mode<synchronous>, transform_indices = @transform_4, window_bounds = array<i64: 16, 1>}, {transform_indices = @transform_5, window_bounds = array<i64: 16, 256>}]} {
    %c0 = arith.constant 0 : index
    %c0_0 = arith.constant 0 : index
    %0 = vector.load %arg2[%c0, %c0_0] : memref<128x24xbf16, #tpu.memory_space<vmem>>, vector<128x24xbf16>
    %c0_1 = arith.constant 0 : index
    %c0_2 = arith.constant 0 : index
    %1 = vector.load %arg1[%c0_1, %c0_2] : memref<24x256xbf16, #tpu.memory_space<vmem>>, vector<24x256xbf16>
    %cst = arith.constant dense<0.000000e+00> : vector<128x256xf32>
    %2 = tpu.matmul %0, %1, %cst {dimension_numbers = #tpu.dot_dimension_numbers<[1], [0], [0], [1], [0, 0, 1, 1], [], []>} : vector<128x24xbf16>, vector<24x256xbf16>, vector<128x256xf32> -> vector<128x256xf32>
    %c0_3 = arith.constant 0 : index
    %c0_4 = arith.constant 0 : index
    %3 = vector.load %arg3[%c0_3, %c0_4] : memref<128x1xf32, #tpu.memory_space<vmem>>, vector<128x1xf32>
    %4 = vector.broadcast %3 : vector<128x1xf32> to vector<128x256xf32>
    %5 = arith.addf %2, %4 : vector<128x256xf32>
    %cst_5 = arith.constant 0.000000e+00 : f32
    %6 = vector.broadcast %cst_5 : f32 to vector<128x256xf32>
    %7 = arith.maximumf %5, %6 : vector<128x256xf32>
    %8 = arith.truncf %7 : vector<128x256xf32> to vector<128x256xbf16>
    %c0_6 = arith.constant 0 : index
    %c0_7 = arith.constant 0 : index
    %9 = vector.load %arg4[%c0_6, %c0_7] : memref<16x128xbf16, #tpu.memory_space<vmem>>, vector<16x128xbf16>
    %cst_8 = arith.constant dense<0.000000e+00> : vector<16x256xf32>
    %10 = tpu.matmul %9, %8, %cst_8 {dimension_numbers = #tpu.dot_dimension_numbers<[1], [0], [0], [1], [0, 0, 1, 1], [], []>} : vector<16x128xbf16>, vector<128x256xbf16>, vector<16x256xf32> -> vector<16x256xf32>
    %c0_9 = arith.constant 0 : index
    %c0_10 = arith.constant 0 : index
    %11 = vector.load %arg5[%c0_9, %c0_10] : memref<16x1xf32, #tpu.memory_space<vmem>>, vector<16x1xf32>
    %12 = vector.broadcast %11 : vector<16x1xf32> to vector<16x256xf32>
    %13 = arith.addf %10, %12 : vector<16x256xf32>
    %cst_11 = arith.constant 5.000000e-01 : f32
    %14 = vector.broadcast %cst_11 : f32 to vector<16x256xf32>
    %15 = arith.mulf %14, %13 : vector<16x256xf32>
    %16 = math.tanh %15 : vector<16x256xf32>
    %cst_12 = arith.constant 5.000000e-01 : f32
    %17 = vector.broadcast %cst_12 : f32 to vector<16x256xf32>
    %18 = arith.mulf %17, %16 : vector<16x256xf32>
    %cst_13 = arith.constant 5.000000e-01 : f32
    %19 = vector.broadcast %cst_13 : f32 to vector<16x256xf32>
    %20 = arith.addf %18, %19 : vector<16x256xf32>
    %21 = arith.truncf %20 : vector<16x256xf32> to vector<16x256xbf16>
    %c0_14 = arith.constant 0 : index
    %c0_15 = arith.constant 0 : index
    %22 = vector.load %arg6[%c0_14, %c0_15] : memref<16x256xbf16, #tpu.memory_space<vmem>>, vector<16x256xbf16>
    tpu.vector_store %arg6[%c0_14, %c0_15], %21 {strides = array<i32>} : memref<16x256xbf16, #tpu.memory_space<vmem>>, vector<16x256xbf16>,
    return
  }
  func.func @transform_0(%arg0: i32) -> (i32, i32) {
    %c0_i32 = arith.constant 0 : i32
    %c0_i32_0 = arith.constant 0 : i32
    return %c0_i32, %arg0 : i32, i32
  }
  func.func @transform_1(%arg0: i32) -> (i32, i32) {
    %c0_i32 = arith.constant 0 : i32
    %c0_i32_0 = arith.constant 0 : i32
    %c0_i32_1 = arith.constant 0 : i32
    return %c0_i32, %c0_i32_0 : i32, i32
  }
  func.func @transform_2(%arg0: i32) -> (i32, i32) {
    %c0_i32 = arith.constant 0 : i32
    %c0_i32_0 = arith.constant 0 : i32
    %c0_i32_1 = arith.constant 0 : i32
    return %c0_i32, %c0_i32_0 : i32, i32
  }
  func.func @transform_3(%arg0: i32) -> (i32, i32) {
    %c0_i32 = arith.constant 0 : i32
    %c0_i32_0 = arith.constant 0 : i32
    %c0_i32_1 = arith.constant 0 : i32
    return %c0_i32, %c0_i32_0 : i32, i32
  }
  func.func @transform_4(%arg0: i32) -> (i32, i32) {
    %c0_i32 = arith.constant 0 : i32
    %c0_i32_0 = arith.constant 0 : i32
    %c0_i32_1 = arith.constant 0 : i32
    return %c0_i32, %c0_i32_0 : i32, i32
  }
  func.func @transform_5(%arg0: i32) -> (i32, i32) {
    %c0_i32 = arith.constant 0 : i32
    %c0_i32_0 = arith.constant 0 : i32
    return %c0_i32, %arg0 : i32, i32
  }
}

</mosaic_0001>

<bundles_post_ra>
// kernel: render.1
= control target key start
LH: loop header
LB: loop body
LE: loop exit
PB: predicated region body
PF: predicated region fallthrough
CT: control target
= control target key end

     0   :  { %s968_s18 = smov 0   ;;  %s970_s19 = smov 0   ;;  %s1183_s0 = inlined_call_operand.vmem [shape: bf16[24,512], index: 0, kind: input, shape index: {}]   ;;  %s1184_s1 = inlined_call_operand.vmem [shape: bf16[128,24], index: 1, kind: input, shape index: {}]   ;;  %s1185_s2 = inlined_call_operand.vmem [shape: f32[128,1], index: 2, kind: input, shape index: {}]   ;;  %s1186_s3 = inlined_call_operand.vmem [shape: bf16[16,128], index: 3, kind: input, shape index: {}]   ;;  %s1187_s4 = inlined_call_operand.vmem [shape: f32[16,1], index: 4, kind: input, shape index: {}]   ;;  %s1188_s5 = inlined_call_operand.vmem [shape: bf16[16,512], index: 5, kind: output, shape index: {}]  }
   0x1   :  { %s972_s20 = smov 0  }
   0x2 LB: > { %s785_s21 = sadd.s32 4294967295, %s935_s20   ;;  %s985_s22 = sadd.s32 1, %s935_s20   ;;  %s935_s20 = sphi %s972_s20, %s1192_s20   ;;  %s931_s19 = sphi %s970_s19, %s1191_s19   ;;  %s927_s18 = sphi %s968_s18, %s1190_s18  }
   0x3   : > { %s19_s23 = ssub.s32 %s935_s20, %s985_s22  ;;  %s22_s24 = sadd.s32 1, %s931_s19 }
   0x4   : > { %p20_p0 = scmp.eq.s32.totalorder %s19_s23, 0  ;;  %p29_p1 = scmp.ne.s32.totalorder %s931_s19, %s927_s18 }
   0x5   : > { %p30_p2 = scmp.eq.s32.totalorder %s935_s20, 0  ;;  %p143_p3 = scmp.eq.s32.totalorder %s785_s21, 1 }
   0x6   : > { %s996_s25 = scalar_select %p20_p0, %s931_s19, %s22_s24  }
   0x7   : > { %p31_p4 = por %p30_p2, %p29_p1  ;;  %p998_p5 = por %p143_p3, %p29_p1 }
   0x8   : > { %p788_p6 = scmp.ge.s32.totalorder %s935_s20, 2 }
   0xa   : > { %177 = sbr.rel (%p788_p6) target bundleno = 22 (0x16), region = 32 }
   0xf   : > { %180 = sbr.rel (!%p31_p4) target bundleno = 22 (0x16), region = 36  ;;  %s182_s27 = sand.u32 (%p31_p4), 1, %s931_s19  }
  0x10   : > { %s858_s28 = sshll.u32 (%p31_p4), %s935_s20, 3  ;;  %s875_s29 = smul.u32 (%p31_p4), 24, %s182_s27 }
  0x11   : > { %s187_s7 = scalar_lea.vmem (%p31_p4), %s1183_s0, %s858_s28 }
  0x12   : > { %v220_v0 = vld [vmem:[%s187_s7] sm:$0xff] (%p31_p4)  ;;  %v222_v1 = vld [vmem:[%s187_s7 + $0x10] sm:$0xff] (%p31_p4)  ;;  %s184_s8 = scalar_lea.vmem (%p31_p4), [#allocation2], %s875_s29 }
  0x13   : > { %v224_v2 = vld [vmem:[%s187_s7 + $0x20] sm:$0xff] (%p31_p4)  ;;  %221 = vst [vmem:[%s184_s8] sm:$0xff] (%p31_p4), %v220_v0 }
  0x14   : > { %223 = vst [vmem:[%s184_s8 + $0x8] sm:$0xff] %v222_v1 }
  0x15   : > { %225 = vst [vmem:[%s184_s8 + $0x10] sm:$0xff] %v224_v2 }
  0x16 PF: > { %p791_p7 = scmp.ge.s32.totalorder %s935_s20, 1  ;;  %p230_p8 = scmp.lt.s32.totalorder %s935_s20, 3 }
  0x18   : > { %p231_p9 = pnand %p791_p7, %p230_p8 }
  0x19   : > { %s237_s11 = sand.u32 (!%p231_p9), 1, %s927_s18  }
  0x1a   : > { %234 = sbr.rel (%p231_p9) target bundleno = 436 (0x1b4), region = 74  ;;  %s792_s15 = sshll.u32 (!%p231_p9), %s237_s11, 4 }
  0x1b   : > { %s876_s12 = smul.u32 (!%p231_p9), 24, %s237_s11  ;;  %s262_s16 = scalar_lea.vmem (!%p231_p9), [#allocation3], %s792_s15 }
  0x1d   : > { %s239_s17 = scalar_lea.vmem (!%p231_p9), [#allocation2], %s876_s12 }
  0x1f   : > { %v299_v3 = vld [vmem:[%s1185_s2 + $0x70] sm:$0xff]  ;;  %v937_v4 = vmov 0   ;;  %v297_v5 = vld [vmem:[%s1185_s2 + $0x60] sm:$0xff]  ;;  %vm461_vm0 = vcmask 1043456   ;;  %v300_v10 = vld [vmem:[%s1185_s2 + $0x78] sm:$0xff]  ;;  %vm436_vm1 = vcmask 195584  }
  0x20   : > { %902 = vset.pattern.permute.xlu0 %v937_v4  ;;  %904 = vset.pattern.permute.xlu2 %v937_v4  ;;  %v295_v6 = vld [vmem:[%s1185_s2 + $0x50] sm:$0xff]  ;;  %v827_v13 = vld [vmem:[%s239_s17] sm:$0xf]  ;;  %v868_v14 = vld [vmem:[%s239_s17 + $0x4] sm:$0xf0]  ;;  %s870_s18 = sshll.u32 (%p998_p5), %s785_s21, 3 }
  0x21   : > { %373 = vperm.xlu0 %902, %v299_v3   ;;  %903 = vset.pattern.permute.xlu1 %v937_v4  ;;  %v284_v7 = vld [vmem:[%s239_s17 + $0x10] sm:$0xff]  ;;  %v867_v15 = vld [vmem:[%s239_s17 + $0x4] sm:$0xf]  ;;  %v829_v16 = vld [vmem:[%s239_s17 + $0x8] sm:$0xf0]  ;;  %v828_v20 = vor.u32 %v868_v14, %v827_v13  ;;  %s691_s23 = scalar_lea.vmem (%p998_p5), %s1188_s5, %s870_s18 }
  0x22   : > { %363 = vperm.xlu1 %903, %v297_v5   ;;  %353 = vperm.xlu2 %904, %v295_v6   ;;  %v428_v8 = vunpack.c.l.b16 %v284_v7  ;;  %v429_v9 = vunpack.c.h.b16 %v284_v7  ;;  %v298_v19 = vld [vmem:[%s1185_s2 + $0x68] sm:$0xff]  ;;  %v296_v21 = vld [vmem:[%s1185_s2 + $0x58] sm:$0xff]  ;;  %v832_v22 = vor.u32 %v867_v15, %v829_v16  ;;  %v859_v23 = vld [vmem:[%s1184_s1] sm:$0xff] }
  0x23   : > { %v864_v24 = vld [vmem:[%s1184_s1 + $0x28] sm:$0xff]  ;;  %v293_v25 = vld [vmem:[%s1185_s2 + $0x40] sm:$0xff]  ;;  %v291_v27 = vld [vmem:[%s1185_s2 + $0x30] sm:$0xff] }
  0x24   : > { %v432_v11 = vpack.c.b16 %v428_v8, %v428_v8  ;;  %v433_v12 = vpack.c.b16 %v429_v9, %v429_v9  ;;  %v294_v26 = vld [vmem:[%s1185_s2 + $0x48] sm:$0xff]  ;;  %v292_v28 = vld [vmem:[%s1185_s2 + $0x38] sm:$0xff]  ;;  %v289_v29 = vld [vmem:[%s1185_s2 + $0x20] sm:$0xff] }
  0x25   : > { %v290_v30 = vld [vmem:[%s1185_s2 + $0x28] sm:$0xff]  ;;  %v865_v32 = vld [vmem:[%s1184_s1 + $0x30] sm:$0xff]  ;;  %v288_v34 = vld [vmem:[%s1185_s2 + $0x18] sm:$0xff] }
  0x26   : > { %v463_v17 = vsel %vm461_vm0, %v432_v11, 0  ;;  %v466_v18 = vsel %vm461_vm0, %v433_v12, 0  ;;  %v860_v31 = vld [vmem:[%s1184_s1 + $0x8] sm:$0xff]  ;;  %v287_v33 = vld [vmem:[%s1185_s2 + $0x10] sm:$0xff]  ;;  %v285_v35 = vld [vmem:[%s1185_s2] sm:$0xff] }
  0x27   : > { %474 = vmatpush.bf16.msra.mxu0 %v463_v17  ;;  %871 = vmatpush.bf16.msra.mxu2 %v463_v17  ;;  %v286_v36 = vld [vmem:[%s1185_s2 + $0x8] sm:$0xff]  ;;  %v616_v37 = vld [vmem:[%s1187_s4] sm:$0xff]  ;;  %v861_v38 = vld [vmem:[%s1184_s1 + $0x10] sm:$0xff] }
  0x28   : > { %523 = vmatpush.bf16.msra.mxu1 %v466_v18  ;;  %873 = vmatpush.bf16.msra.mxu3 %v466_v18  ;;  %v866_v39 = vld [vmem:[%s1184_s1 + $0x38] sm:$0xff]  ;;  %v617_v41 = vld [vmem:[%s1187_s4 + $0x8] sm:$0xff]  ;;  %v863_v42 = vld [vmem:[%s1184_s1 + $0x20] sm:$0xff] }
  0x29   : > { %378 = vperm.xlu0 %902, %v300_v10   ;;  %v862_v40 = vld [vmem:[%s1184_s1 + $0x18] sm:$0xff] }
  0x2a   : > { %368 = vperm.xlu1 %903, %v298_v19   ;;  %358 = vperm.xlu2 %904, %v296_v21  }
  0x2b   : > { %475 = vmatpush.bf16.msra.mxu0 %v828_v20  ;;  %872 = vmatpush.bf16.msra.mxu2 %v828_v20 }
  0x2c   : > { %524 = vmatpush.bf16.msra.mxu1 %v832_v22  ;;  %874 = vmatpush.bf16.msra.mxu3 %v832_v22 }
  0x2e   : > { %833 = vmatmul.msk.bf16.vlgmr.msra.gmra.mxu0 %vm436_vm1, %v859_v23  ;;  %838 = vmatmul.msk.bf16.vlgmr.msra.gmra.mxu2 %vm436_vm1, %v864_v24 }
  0x2f   : > { %841 = vmatmul.msk.bf16.vlgmr.msra.gmra.mxu1 %vm436_vm1, %v859_v23  ;;  %846 = vmatmul.msk.bf16.vlgmr.msra.gmra.mxu3 %vm436_vm1, %v864_v24 }
  0x31   : > { %343 = vperm.xlu0 %902, %v293_v25  }
  0x32   : > { %348 = vperm.xlu1 %903, %v294_v26   ;;  %333 = vperm.xlu2 %904, %v291_v27  }
  0x39   : > { %338 = vperm.xlu0 %902, %v292_v28  }
  0x3a   : > { %323 = vperm.xlu1 %903, %v289_v29   ;;  %328 = vperm.xlu2 %904, %v290_v30  }
  0x3e   : > { %834 = vmatmul.msk.bf16.gmra.mxu0 %vm436_vm1, %v860_v31  ;;  %839 = vmatmul.msk.bf16.gmra.mxu2 %vm436_vm1, %v865_v32 }
  0x3f   : > { %842 = vmatmul.msk.bf16.gmra.mxu1 %vm436_vm1, %v860_v31  ;;  %847 = vmatmul.msk.bf16.gmra.mxu3 %vm436_vm1, %v865_v32 }
  0x41   : > { %313 = vperm.xlu0 %902, %v287_v33  }
  0x42   : > { %318 = vperm.xlu1 %903, %v288_v34   ;;  %303 = vperm.xlu2 %904, %v285_v35  }
  0x49   : > { %308 = vperm.xlu0 %902, %v286_v36  }
  0x4a   : > { %620 = vperm.xlu1 %903, %v616_v37   ;;  %625 = vperm.xlu2 %904, %v617_v41  }
  0x4e   : > { %835 = vmatmul.msk.bf16.gmra.mxu0 %vm436_vm1, %v861_v38  ;;  %840 = vmatmul.msk.bf16.gmra.mxu2 %vm436_vm1, %v866_v39 }
  0x4f   : > { %843 = vmatmul.msk.bf16.gmra.mxu1 %vm436_vm1, %v861_v38  ;;  %848 = vmatmul.msk.bf16.gmra.mxu3 %vm436_vm1, %v866_v39 }
  0x5e   : > { %836 = vmatmul.msk.bf16.gmra.mxu0 %vm436_vm1, %v862_v40 }
  0x5f   : > { %844 = vmatmul.msk.bf16.gmra.mxu1 %vm436_vm1, %v862_v40 }
  0x6e   : > { %837 = vmatmul.msk.bf16.gmra.mxu0 %vm436_vm1, %v863_v42 }
  0x6f   : > { %845 = vmatmul.msk.bf16.gmra.mxu1 %vm436_vm1, %v863_v42 }
  0x7c   : > { %v354_v43 = vpop.permute.xlu2 %353 }
  0x84   : > { %v1107_v45 = vpop.permute.xlu2 %358 }
  0x8c   : > { %v1109_v47 = vpop.permute.xlu2 %333 }
  0x93   : > { %v374_v44 = vpop.permute.xlu0 %373 }
  0x94   : > { %v1115_v51 = vpop.permute.xlu2 %328  ;;  %v364_v18 = vpop.permute.xlu1 %363 }
  0x9b   : > { %v379_v46 = vpop.permute.xlu0 %378 }
  0x9c   : > { %v304_v58 = vpop.permute.xlu2 %303  ;;  %v369_v25 = vpop.permute.xlu1 %368 }
  0xa3   : > { %v1111_v48 = vpop.permute.xlu0 %343 }
  0xab   : > { %v1113_v49 = vpop.permute.xlu0 %338  ;;  %v477_v50 = vpop.f32.mrf.mxu0 }
  0xac   : > { %v526_v52 = vpop.f32.mrf.mxu1  ;;  %v478_v59 = vadd.f32 %v477_v50, %v304_v58 }
  0xad   : > { %v527_v60 = vadd.f32 %v526_v52, %v304_v58 }
  0xae   : > { %v566_v4 = vmax.f32 %v478_v59, 0.0 }
  0xaf   : > { %v567_v5 = vmax.f32 %v527_v60, 0.0 }
  0xb1   : > { %v502_v54 = vpop.f32.mrf.mxu2 }
  0xb2   : > { %v551_v55 = vpop.f32.mrf.mxu3  ;;  %v503_v39 = vadd.f32 %v502_v54, %v354_v43 }
  0xb3   : > { %v1117_v53 = vpop.permute.xlu0 %313  ;;  %v479_v56 = vpop.f32.mrf.mxu0  ;;  %v552_v40 = vadd.f32 %v551_v55, %v354_v43 }
  0xb4   : > { %v528_v57 = vpop.f32.mrf.mxu1  ;;  %v586_v60 = vmax.f32 %v503_v39, 0.0 }
  0xb9   : > { %v504_v62 = vpop.f32.mrf.mxu2 }
  0xba   : > { %v553_v1 = vpop.f32.mrf.mxu3  ;;  %v505_v42 = vadd.f32 %v504_v62, %v1107_v45 }
  0xbb   : > { %v309_v61 = vpop.permute.xlu0 %308  ;;  %v1119_v2 = vpop.f32.mrf.mxu0 }
  0xbc   : > { %v480_v63 = vadd.f32 %v479_v56, %v309_v61  ;;  %v529_v0 = vadd.f32 %v528_v57, %v309_v61  ;;  %v1121_v3 = vpop.f32.mrf.mxu1  ;;  %v554_v56 = vadd.f32 %v553_v1, %v1107_v45  ;;  %v588_v61 = vmax.f32 %v505_v42, 0.0 }
  0xbe   : > { %v568_v6 = vmax.f32 %v480_v63, 0.0  ;;  %v569_v7 = vmax.f32 %v529_v0, 0.0  ;;  %v587_v0 = vmax.f32 %v552_v40, 0.0  ;;  %v589_v54 = vmax.f32 %v554_v56, 0.0 }
  0xbf   : > { %v608_v62 = vpack.c.bf16 %v588_v61, %v586_v60 }
  0xc0   : > { %v1123_v8 = vpack.c.bf16 %v568_v6, %v566_v4  ;;  %v1125_v9 = vpack.c.bf16 %v569_v7, %v567_v5  ;;  %v349_v4 = vpop.permute.xlu1 %348  ;;  %v609_v5 = vpack.c.bf16 %v589_v54, %v587_v0 }
  0xc1   : > { %v507_v10 = vpop.f32.mrf.mxu2 }
  0xc2   : > { %v556_v11 = vpop.f32.mrf.mxu3  ;;  %v508_v27 = vadd.f32 %v507_v10, %v364_v18 }
  0xc3   : > { %v1127_v12 = vpop.f32.mrf.mxu0  ;;  %v557_v33 = vadd.f32 %v556_v11, %v364_v18 }
  0xc4   : > { %v1129_v13 = vpop.f32.mrf.mxu1 }
  0xc5   : > { %v591_v57 = vmax.f32 %v557_v33, 0.0 }
  0xc8   : > { %v324_v6 = vpop.permute.xlu1 %323 }
  0xc9   : > { %v509_v14 = vpop.f32.mrf.mxu2 }
  0xca   : > { %v558_v15 = vpop.f32.mrf.mxu3  ;;  %v510_v28 = vadd.f32 %v509_v14, %v369_v25 }
  0xcb   : > { %v1131_v16 = vpop.f32.mrf.mxu0  ;;  %v559_v34 = vadd.f32 %v558_v15, %v369_v25 }
  0xcc   : > { %v1133_v17 = vpop.f32.mrf.mxu1  ;;  %v592_v50 = vmax.f32 %v510_v28, 0.0 }
  0xcd   : > { %v593_v58 = vmax.f32 %v559_v34, 0.0 }
  0xcf   : > { %v611_v55 = vpack.c.bf16 %v593_v58, %v591_v57 }
  0xd1   : > { %v512_v19 = vpop.f32.mrf.mxu2 }
  0xd2   : > { %v561_v20 = vpop.f32.mrf.mxu3  ;;  %v513_v23 = vadd.f32 %v512_v19, %v374_v44 }
  0xd3   : > { %v1135_v21 = vpop.f32.mrf.mxu0  ;;  %v562_v24 = vadd.f32 %v561_v20, %v374_v44  ;;  %v590_v44 = vmax.f32 %v508_v27, 0.0 }
  0xd4   : > { %v1137_v22 = vpop.f32.mrf.mxu1  ;;  %v594_v29 = vmax.f32 %v513_v23, 0.0 }
  0xd5   : > { %v595_v35 = vmax.f32 %v562_v24, 0.0  ;;  %v610_v63 = vpack.c.bf16 %v592_v50, %v590_v44  ;;  %v539_v33 = vadd.f32 %v1137_v22, %v1115_v51 }
  0xd7   : > { %v577_v40 = vmax.f32 %v539_v33, 0.0 }
  0xd9   : > { %v514_v26 = vpop.f32.mrf.mxu2 }
  0xda   : > { %v515_v30 = vadd.f32 %v514_v26, %v379_v46  ;;  %v563_v31 = vpop.f32.mrf.mxu3 }
  0xdb   : > { %v492_v32 = vpop.f32.mrf.mxu0  ;;  %v564_v36 = vadd.f32 %v563_v31, %v379_v46  ;;  %v319_v31 = vpop.permute.xlu1 %318 }
  0xdc   : > { %v541_v37 = vpop.f32.mrf.mxu1  ;;  %v596_v38 = vmax.f32 %v515_v30, 0.0  ;;  %v493_v23 = vadd.f32 %v492_v32, %v1109_v47  ;;  %v534_v39 = vadd.f32 %v1129_v13, %v319_v31 }
  0xdd   : > { %v597_v41 = vmax.f32 %v564_v36, 0.0  ;;  %v542_v26 = vadd.f32 %v541_v37, %v1109_v47  ;;  %v537_v36 = vadd.f32 %v1133_v17, %v324_v6  ;;  %v485_v37 = vadd.f32 %v1127_v12, %v319_v31 }
  0xde   : > { %v612_v52 = vpack.c.bf16 %v596_v38, %v594_v29  ;;  %v490_v29 = vadd.f32 %v1135_v21, %v1115_v51  ;;  %v578_v32 = vmax.f32 %v493_v23, 0.0  ;;  %v483_v51 = vadd.f32 %v1119_v2, %v1117_v53  ;;  %v869_v2 = vld [vmem:[%s1186_s3] sm:$0xff] }
  0xdf   : > { %v613_v59 = vpack.c.bf16 %v597_v41, %v595_v35  ;;  %v488_v35 = vadd.f32 %v1131_v16, %v324_v6  ;;  %v579_v47 = vmax.f32 %v542_v26, 0.0  ;;  %v532_v16 = vadd.f32 %v1121_v3, %v1117_v53 }
  0xe0   : > { %634 = vmatpush.bf16.msrb.mxu2 %v612_v52  ;;  %v576_v38 = vmax.f32 %v490_v29, 0.0  ;;  %v575_v42 = vmax.f32 %v537_v36, 0.0  ;;  %v572_v17 = vmax.f32 %v485_v37, 0.0  ;;  %v573_v50 = vmax.f32 %v534_v39, 0.0 }
  0xe1   : > { %648 = vmatpush.bf16.msrb.mxu3 %v613_v59  ;;  %v574_v22 = vmax.f32 %v488_v35, 0.0  ;;  %v570_v52 = vmax.f32 %v483_v51, 0.0  ;;  %v571_v56 = vmax.f32 %v532_v16, 0.0 }
  0xe2   : > { %v603_v12 = vpack.c.bf16 %v577_v40, %v575_v42 }
  0xe3   : > { %v494_v46 = vpop.f32.mrf.mxu0  ;;  %v602_v44 = vpack.c.bf16 %v576_v38, %v574_v22  ;;  %v600_v13 = vpack.c.bf16 %v572_v17, %v570_v52  ;;  %v601_v57 = vpack.c.bf16 %v573_v50, %v571_v56  ;;  %v621_v53 = vpop.permute.xlu1 %620 }
  0xe4   : > { %v543_v43 = vpop.f32.mrf.mxu1  ;;  %635 = vmatpush.bf16.msrb.mxu2 %v610_v63  ;;  %v495_v14 = vadd.f32 %v494_v46, %v1113_v49  ;;  %v626_v63 = vpop.permute.xlu2 %625 }
  0xe5   : > { %649 = vmatpush.bf16.msrb.mxu3 %v611_v55  ;;  %v544_v19 = vadd.f32 %v543_v43, %v1113_v49 }
  0xe7   : > { %v581_v34 = vmax.f32 %v544_v19, 0.0 }
  0xe8   : > { %636 = vmatpush.bf16.msrb.mxu2 %v608_v62 }
  0xe9   : > { %650 = vmatpush.bf16.msrb.mxu3 %v609_v5  ;;  %v605_v41 = vpack.c.bf16 %v581_v34, %v579_v47 }
  0xeb   : > { %v497_v45 = vpop.f32.mrf.mxu0 }
  0xec   : > { %v546_v1 = vpop.f32.mrf.mxu1  ;;  %v498_v7 = vadd.f32 %v497_v45, %v1111_v48 }
  0xed   : > { %v547_v10 = vadd.f32 %v546_v1, %v1111_v48  ;;  %v580_v48 = vmax.f32 %v495_v14, 0.0 }
  0xee   : > { %v582_v24 = vmax.f32 %v498_v7, 0.0 }
  0xef   : > { %v583_v27 = vmax.f32 %v547_v10, 0.0  ;;  %v604_v21 = vpack.c.bf16 %v580_v48, %v578_v32 }
  0xf3   : > { %v499_v11 = vpop.f32.mrf.mxu0 }
  0xf4   : > { %v500_v15 = vadd.f32 %v499_v11, %v349_v4  ;;  %v548_v18 = vpop.f32.mrf.mxu1 }
  0xf5   : > { %v549_v20 = vadd.f32 %v548_v18, %v349_v4 }
  0xf6   : > { %v584_v25 = vmax.f32 %v500_v15, 0.0 }
  0xf7   : > { %v585_v28 = vmax.f32 %v549_v20, 0.0 }
  0xf8   : > { %v606_v30 = vpack.c.bf16 %v584_v25, %v582_v24 }
  0xf9   : > { %v607_v49 = vpack.c.bf16 %v585_v28, %v583_v27 }
  0xfa   : > { %637 = vmatpush.bf16.msrb.mxu2 %v606_v30 }
  0xfb   : > { %651 = vmatpush.bf16.msrb.mxu3 %v607_v49 }
  0xfe   : > { %638 = vmatpush.bf16.msrb.mxu2 %v604_v21 }
  0xff   : > { %652 = vmatpush.bf16.msrb.mxu3 %v605_v41 }
 0x102   : > { %639 = vmatpush.bf16.msrb.mxu2 %v602_v44 }
 0x103   : > { %653 = vmatpush.bf16.msrb.mxu3 %v603_v12 }
 0x106   : > { %640 = vmatpush.bf16.msrb.mxu2 %v600_v13 }
 0x107   : > { %654 = vmatpush.bf16.msrb.mxu3 %v601_v57 }
 0x10a   : > { %641 = vmatpush.bf16.msrb.mxu2 %v1123_v8 }
 0x10b   : > { %655 = vmatpush.bf16.msrb.mxu3 %v1125_v9 }
 0x10d   : > { %642 = vmatmul.bf16.vlgmr.msrb.gmra.mxu2 %v869_v2 }
 0x10e   : > { %656 = vmatmul.bf16.vlgmr.msrb.gmra.mxu3 %v869_v2 }
 0x190   : > { %v643_v3 = vpop.f32.mrf.mxu2 }
 0x191   : > { %v644_v58 = vadd.f32 %v643_v3, %v621_v53  ;;  %v657_v59 = vpop.f32.mrf.mxu3 }
 0x192   : > { %v658_v60 = vadd.f32 %v657_v59, %v621_v53 }
 0x193   : > { %v662_v61 = vmul.f32 0.5, %v644_v58 }
 0x194   : > { %v663_v46 = vmul.f32 0.5, %v658_v60 }
 0x195   : > { %905 = vtanh.f32 %v662_v61 }
 0x196   : > { %907 = vtanh.f32 %v663_v46 }
 0x198   : > { %v645_v0 = vpop.f32.mrf.mxu2 }
 0x199   : > { %v646_v54 = vadd.f32 %v645_v0, %v626_v63  ;;  %v659_v43 = vpop.f32.mrf.mxu3 }
 0x19a   : > { %v660_v55 = vadd.f32 %v659_v43, %v626_v63 }
 0x19b   : > { %v906_v8 = vpop.eup %905  ;;  %v664_v4 = vmul.f32 0.5, %v646_v54 }
 0x19c   : > { %v908_v9 = vpop.eup %907  ;;  %v670_v62 = vmul.f32 0.5, %v906_v8  ;;  %v665_v5 = vmul.f32 0.5, %v660_v55 }
 0x19d   : > { %v671_v45 = vmul.f32 0.5, %v908_v9  ;;  %909 = vtanh.f32 %v664_v4 }
 0x19e   : > { %v674_v1 = vadd.f32 0.5, %v670_v62  ;;  %911 = vtanh.f32 %v665_v5 }
 0x19f   : > { %v675_v6 = vadd.f32 0.5, %v671_v45 }
 0x1a1   : > { %v678_v7 = vpack.c.bf16 %v675_v6, %v674_v1 }
 0x1a3   : > { %v910_v10 = vpop.eup %909  ;;  %680 = vst [vmem:[%s262_s16] sm:$0xff] %v678_v7 }
 0x1a4   : > { %v912_v11 = vpop.eup %911  ;;  %v672_v14 = vmul.f32 0.5, %v910_v10 }
 0x1a5   : > { %v673_v15 = vmul.f32 0.5, %v912_v11 }
 0x1a6   : > { %v676_v18 = vadd.f32 0.5, %v672_v14 }
 0x1a7   : > { %v677_v19 = vadd.f32 0.5, %v673_v15  ;;  %688 = sbr.rel (!%p998_p5) target bundleno = 436 (0x1b4), region = 82 }
 0x1a9   : > { %v679_v20 = vpack.c.bf16 %v677_v19, %v676_v18 }
 0x1aa   : > { %v722_v23 = vld [vmem:[%s262_s16] sm:$0xff] (%p998_p5) }
 0x1ab   : > { %681 = vst [vmem:[%s262_s16 + $0x8] sm:$0xff] %v679_v20 }
 0x1ac   : > { %723 = vst [vmem:[%s691_s23] sm:$0xff] %v722_v23 }
 0x1b2   : > { %v724_v24 = vld [vmem:[%s262_s16 + $0x8] sm:$0xff] }
 0x1b3   : > { %725 = vst [vmem:[%s691_s23 + $0x10] sm:$0xff] %v724_v24 }
 0x1b4 PF: > { %p12_p10 = scmp.ge.s32.totalorder %s985_s22, 4   ;;  %s1190_s18 = smov %s931_s19 }
 0x1b5   : > { %s1191_s19 = smov %s996_s25  ;;  %s1192_s20 = smov %s985_s22 }
 0x1b6   :  { %14 = sbr.rel (!%p12_p10) target bundleno = 2 (0x2), region = 151 }

</bundles_post_ra>
